<compile_context>
chip_gen: v7x
topology: tpu7x:2x2x1
jax: 0.10.0
libtpu: 0.0.40
codegen_flags: <defaults>
</compile_context>

<pallas_src>
import jax
import jax.numpy as jnp
from jax.experimental import pallas as pl
from jax.experimental.pallas import tpu as pltpu
from math import prod

# ----------------------------------------------------------------------------
# Problem sizes (synthetic "env"): observation_space.shape = (4, 4, 4),
# action_space.n = 6, hidden_units = 32, hidden_units2 = 64.
# ----------------------------------------------------------------------------
OBS_SHAPE = (4, 4, 4)
OBS_DIM = prod(OBS_SHAPE)     # 64
HIDDEN1 = 32
HIDDEN2 = 64
N_ACTIONS = 6

LANES = 128                   # vreg lane width; every padded width uses this
TILE_B = 128                  # batch rows per grid step (raise for big rollouts)

# Packed-parameter slab layout: three 128-row weight blocks, biases folded in.
R_W1 = 0                      # rows   0.. 63: W1 (cols 0..31); row 64: [b1 | 1@col32]
R_W2 = 128                    # rows 128..159: W2 (cols 0..63); row 160: [b2 | 1@col64]
R_WH = 256                    # rows 256..319: [Wa | Wv] (cols 0..6); row 320: [ba | bv]
PARAM_ROWS = 384              # 3 * 128 rows (multiple of 8, lane-dense slab)


def _policy_kernel(x_ref, p_ref, out_ref):
    """One batch tile: three fused MXU matmuls (biases folded) + masked softmax."""
    x = x_ref[...]                                   # (TILE_B, 128); lane OBS_DIM == 1.0

    w1 = p_ref[R_W1:R_W1 + LANES, :]                 # (128, 128)
    w2 = p_ref[R_W2:R_W2 + LANES, :]                 # (128, 128)
    wh = p_ref[R_WH:R_WH + LANES, :]                 # (128, 128) fused action+value heads

    # affine1 + ReLU; bias comes from the constant-1 lane, which is re-emitted
    # at lane HIDDEN1 of h1 (relu(1) == 1), padded lanes stay exactly 0.
    h1 = jnp.maximum(jnp.dot(x, w1, preferred_element_type=jnp.float32), 0.0)
    # affine2 + ReLU; constant lane re-emitted at lane HIDDEN2 of h2.
    h2 = jnp.maximum(jnp.dot(h1, w2, preferred_element_type=jnp.float32), 0.0)
    # fused heads: lanes 0..5 = action logits, lane 6 = state value, rest 0.
    heads = jnp.dot(h2, wh, preferred_element_type=jnp.float32)        # (TILE_B, 128)

    lane = jax.lax.broadcasted_iota(jnp.int32, heads.shape, 1)

    # softmax over the 6 real action lanes; padded lanes masked to -inf
    logits = jnp.where(lane < N_ACTIONS, heads, -jnp.inf)
    m = jnp.max(logits, axis=-1, keepdims=True)
    e = jnp.exp(logits - m)                          # exp(-inf) = 0 on padded lanes
    inv = pl.reciprocal(jnp.sum(e, axis=-1, keepdims=True), approx=True)
    probs = e * inv                                  # lanes >= N_ACTIONS are 0

    # lane-dense output slab: probs in lanes 0..5, value in lane 6, zeros elsewhere
    out_ref[...] = jnp.where(lane == N_ACTIONS, heads, probs)


def init_params(key):
    """Deterministic synthetic parameters (PyTorch Linear shapes, stored as (in, out))."""
    ks = jax.random.split(key, 8)
    scale = 0.1
    w1 = scale * jax.random.normal(ks[0], (OBS_DIM, HIDDEN1), jnp.float32)
    b1 = scale * jax.random.normal(ks[1], (HIDDEN1,), jnp.float32)
    w2 = scale * jax.random.normal(ks[2], (HIDDEN1, HIDDEN2), jnp.float32)
    b2 = scale * jax.random.normal(ks[3], (HIDDEN2,), jnp.float32)
    wa = scale * jax.random.normal(ks[4], (HIDDEN2, N_ACTIONS), jnp.float32)
    ba = scale * jax.random.normal(ks[5], (N_ACTIONS,), jnp.float32)
    wv = scale * jax.random.normal(ks[6], (HIDDEN2, 1), jnp.float32)
    bv = scale * jax.random.normal(ks[7], (1,), jnp.float32)
    return (w1, b1, w2, b2, wa, ba, wv, bv)


def pack_params(params):
    """Pack weights AND biases into one zero-padded (384, 128) f32 slab.

    Biases are folded into the weight blocks: the input carries a constant 1.0
    at lane OBS_DIM; each block's "bias row" adds the bias and re-creates the
    constant lane for the next layer, so the kernel needs no explicit adds.
    """
    w1, b1, w2, b2, wa, ba, wv, bv = params
    slab = jnp.zeros((PARAM_ROWS, LANES), jnp.float32)
    # layer 1: in lanes 0..63 (+const lane 64) -> out lanes 0..31 (+const lane 32)
    slab = slab.at[R_W1:R_W1 + OBS_DIM, :HIDDEN1].set(w1)
    slab = slab.at[R_W1 + OBS_DIM, :HIDDEN1].set(b1)
    slab = slab.at[R_W1 + OBS_DIM, HIDDEN1].set(1.0)
    # layer 2: in lanes 0..31 (+const lane 32) -> out lanes 0..63 (+const lane 64)
    slab = slab.at[R_W2:R_W2 + HIDDEN1, :HIDDEN2].set(w2)
    slab = slab.at[R_W2 + HIDDEN1, :HIDDEN2].set(b2)
    slab = slab.at[R_W2 + HIDDEN1, HIDDEN2].set(1.0)
    # fused heads: in lanes 0..63 (+const lane 64) -> lanes 0..5 actions, lane 6 value
    slab = slab.at[R_WH:R_WH + HIDDEN2, :N_ACTIONS].set(wa)
    slab = slab.at[R_WH:R_WH + HIDDEN2, N_ACTIONS].set(wv[:, 0])
    slab = slab.at[R_WH + HIDDEN2, :N_ACTIONS].set(ba)
    slab = slab.at[R_WH + HIDDEN2, N_ACTIONS].set(bv[0])
    return slab


def policy_forward_batch(obs_batch, packed_params, *, tile_b=TILE_B):
    """Batched forward: obs_batch (B, *OBS_SHAPE) -> probs (B, n_actions), values (B, 1)."""
    B = obs_batch.shape[0]
    x = obs_batch.reshape(B, -1).astype(jnp.float32)                  # (B, obs_dim)
    n_tiles = pl.cdiv(B, tile_b)
    b_pad = n_tiles * tile_b
    # lane-pad obs to 128, row-pad the batch, and set the constant-1 bias lane
    x_pad = jnp.zeros((b_pad, LANES), jnp.float32)
    x_pad = x_pad.at[:B, :OBS_DIM].set(x)
    x_pad = x_pad.at[:, OBS_DIM].set(1.0)

    out = pl.pallas_call(
        _policy_kernel,
        out_shape=jax.ShapeDtypeStruct((b_pad, LANES), jnp.float32),
        grid_spec=pltpu.PrefetchScalarGridSpec(
            num_scalar_prefetch=0,
            grid=(n_tiles,),
            in_specs=[
                pl.BlockSpec((tile_b, LANES), lambda i: (i, 0)),          # obs tile
                pl.BlockSpec((PARAM_ROWS, LANES), lambda i: (0, 0)),      # resident params
            ],
            out_specs=pl.BlockSpec((tile_b, LANES), lambda i: (i, 0)),    # lane-dense out
        ),
        compiler_params=pltpu.CompilerParams(dimension_semantics=("parallel",)),
    )(x_pad, packed_params)

    probs = out[:B, :N_ACTIONS]
    values = out[:B, N_ACTIONS:N_ACTIONS + 1]
    return probs, values


def policy_forward(obs, packed_params):
    """Single-observation forward matching the PyTorch module's forward()."""
    probs, values = policy_forward_batch(obs.reshape(1, -1), packed_params)
    return probs[0], values[0]        # (n_actions,), (1,)


def policy_forward_ref_batch(obs_batch, params):
    """Pure-JAX reference for correctness checking."""
    w1, b1, w2, b2, wa, ba, wv, bv = params
    x = obs_batch.reshape(obs_batch.shape[0], -1).astype(jnp.float32)
    h1 = jnp.maximum(x @ w1 + b1, 0.0)
    h2 = jnp.maximum(h1 @ w2 + b2, 0.0)
    probs = jax.nn.softmax(h2 @ wa + ba, axis=-1)
    vals = h2 @ wv + bv
    return probs, vals


if __name__ == "__main__":
    key = jax.random.PRNGKey(0)
    k_obs, k_par, k_obs1 = jax.random.split(key, 3)

    params = init_params(k_par)
    packed = pack_params(params)

    # batched rollout-style call; B deliberately not a tile multiple to
    # exercise the batch-padding path (grid of 2 tiles of 128 rows).
    B = 200
    obs_batch = jax.random.normal(k_obs, (B,) + OBS_SHAPE, jnp.float32)
    probs, values = policy_forward_batch(obs_batch, packed)
    jax.block_until_ready((probs, values))

    ref_probs, ref_vals = policy_forward_ref_batch(obs_batch, params)
    assert probs.shape == (B, N_ACTIONS)
    assert values.shape == (B, 1)
    assert jnp.allclose(probs, ref_probs, atol=2e-3, rtol=2e-3)        # approx reciprocal
    assert jnp.allclose(values, ref_vals, atol=1e-4, rtol=1e-4)
    assert jnp.allclose(jnp.sum(probs, axis=-1), 1.0, atol=5e-3)

    # single-observation call with the original module's return shapes
    obs = jax.random.normal(k_obs1, OBS_SHAPE, jnp.float32)
    p1, v1 = policy_forward(obs, packed)
    jax.block_until_ready((p1, v1))
    rp, rv = policy_forward_ref_batch(obs[None], params)
    assert p1.shape == (N_ACTIONS,)
    assert v1.shape == (1,)
    assert jnp.allclose(p1, rp[0], atol=2e-3, rtol=2e-3)
    assert jnp.allclose(v1, rv[0], atol=1e-4, rtol=1e-4)

    print("KERNEL_OK")
</pallas_src>

<mosaic_0001>
module attributes {stable_mosaic.version = 11 : i64} {
  func.func @_policy_kernel(%arg0: i32, %arg1: memref<128x128xf32, #tpu.memory_space<vmem>>, %arg2: memref<384x128xf32, #tpu.memory_space<vmem>>, %arg3: memref<128x128xf32, #tpu.memory_space<vmem>>) attributes {dimension_semantics = [#tpu.dimension_semantics<parallel>], iteration_bounds = array<i64: 2>, scalar_prefetch = 0 : i64, scratch_operands = 0 : i64, tpu.core_type = #tpu.core_type<tc>, window_params = [{transform_indices = @transform_0, window_bounds = array<i64: 128, 128>}, {pipeline_mode = #tpu.pipeline_mode<synchronous>, transform_indices = @transform_1, window_bounds = array<i64: 384, 128>}, {transform_indices = @transform_2, window_bounds = array<i64: 128, 128>}]} {
    %c0 = arith.constant 0 : index
    %c0_0 = arith.constant 0 : index
    %0 = vector.load %arg1[%c0, %c0_0] : memref<128x128xf32, #tpu.memory_space<vmem>>, vector<128x128xf32>
    %c0_1 = arith.constant 0 : index
    %c0_2 = arith.constant 0 : index
    %1 = vector.load %arg2[%c0_1, %c0_2] : memref<384x128xf32, #tpu.memory_space<vmem>>, vector<128x128xf32>
    %c128 = arith.constant 128 : index
    %c0_3 = arith.constant 0 : index
    %2 = vector.load %arg2[%c128, %c0_3] : memref<384x128xf32, #tpu.memory_space<vmem>>, vector<128x128xf32>
    %c256 = arith.constant 256 : index
    %c0_4 = arith.constant 0 : index
    %3 = vector.load %arg2[%c256, %c0_4] : memref<384x128xf32, #tpu.memory_space<vmem>>, vector<128x128xf32>
    %cst = arith.constant dense<0.000000e+00> : vector<128x128xf32>
    %4 = tpu.matmul %0, %1, %cst {dimension_numbers = #tpu.dot_dimension_numbers<[1], [0], [0], [1], [0, 0, 1, 1], [], []>} : vector<128x128xf32>, vector<128x128xf32>, vector<128x128xf32> -> vector<128x128xf32>
    %cst_5 = arith.constant 0.000000e+00 : f32
    %5 = vector.broadcast %cst_5 : f32 to vector<128x128xf32>
    %6 = arith.maximumf %4, %5 : vector<128x128xf32>
    %cst_6 = arith.constant dense<0.000000e+00> : vector<128x128xf32>
    %7 = tpu.matmul %6, %2, %cst_6 {dimension_numbers = #tpu.dot_dimension_numbers<[1], [0], [0], [1], [0, 0, 1, 1], [], []>} : vector<128x128xf32>, vector<128x128xf32>, vector<128x128xf32> -> vector<128x128xf32>
    %cst_7 = arith.constant 0.000000e+00 : f32
    %8 = vector.broadcast %cst_7 : f32 to vector<128x128xf32>
    %9 = arith.maximumf %7, %8 : vector<128x128xf32>
    %cst_8 = arith.constant dense<0.000000e+00> : vector<128x128xf32>
    %10 = tpu.matmul %9, %3, %cst_8 {dimension_numbers = #tpu.dot_dimension_numbers<[1], [0], [0], [1], [0, 0, 1, 1], [], []>} : vector<128x128xf32>, vector<128x128xf32>, vector<128x128xf32> -> vector<128x128xf32>
    %11 = tpu.iota {dimensions = array<i32: 1>} : vector<128x128xi32>
    %c6_i32 = arith.constant 6 : i32
    %12 = vector.broadcast %c6_i32 : i32 to vector<128x128xi32>
    %13 = arith.cmpi slt, %11, %12 : vector<128x128xi32>
    %cst_9 = arith.constant 0xFF800000 : f32
    %14 = vector.broadcast %cst_9 : f32 to vector<128x128xf32>
    %15 = arith.select %13, %10, %14 : vector<128x128xi1>, vector<128x128xf32>
    %cst_10 = arith.constant dense<0xFF800000> : vector<128xf32>
    %16 = vector.multi_reduction <maximumf>, %15, %cst_10 [1] : vector<128x128xf32> to vector<128xf32>
    %17 = vector.shape_cast %16 : vector<128xf32> to vector<128x1xf32>
    %18 = vector.broadcast %17 : vector<128x1xf32> to vector<128x128xf32>
    %19 = arith.subf %15, %18 : vector<128x128xf32>
    %20 = math.exp %19 : vector<128x128xf32>
    %cst_11 = arith.constant dense<0.000000e+00> : vector<128xf32>
    %21 = vector.multi_reduction <add>, %20, %cst_11 [1] : vector<128x128xf32> to vector<128xf32>
    %22 = vector.shape_cast %21 : vector<128xf32> to vector<128x1xf32>
    %23 = tpu.reciprocal %22 {approx = true} : vector<128x1xf32> -> vector<128x1xf32>
    %24 = vector.broadcast %23 : vector<128x1xf32> to vector<128x128xf32>
    %25 = arith.mulf %20, %24 : vector<128x128xf32>
    %c6_i32_12 = arith.constant 6 : i32
    %26 = vector.broadcast %c6_i32_12 : i32 to vector<128x128xi32>
    %27 = arith.cmpi eq, %11, %26 : vector<128x128xi32>
    %28 = arith.select %27, %10, %25 : vector<128x128xi1>, vector<128x128xf32>
    %c0_13 = arith.constant 0 : index
    %c0_14 = arith.constant 0 : index
    %29 = vector.load %arg3[%c0_13, %c0_14] : memref<128x128xf32, #tpu.memory_space<vmem>>, vector<128x128xf32>
    tpu.vector_store %arg3[%c0_13, %c0_14], %28 {strides = array<i32>} : memref<128x128xf32, #tpu.memory_space<vmem>>, vector<128x128xf32>,
    return
  }
  func.func @transform_0(%arg0: i32) -> (i32, i32) {
    %c0_i32 = arith.constant 0 : i32
    %c0_i32_0 = arith.constant 0 : i32
    return %arg0, %c0_i32 : i32, i32
  }
  func.func @transform_1(%arg0: i32) -> (i32, i32) {
    %c0_i32 = arith.constant 0 : i32
    %c0_i32_0 = arith.constant 0 : i32
    %c0_i32_1 = arith.constant 0 : i32
    return %c0_i32, %c0_i32_0 : i32, i32
  }
  func.func @transform_2(%arg0: i32) -> (i32, i32) {
    %c0_i32 = arith.constant 0 : i32
    %c0_i32_0 = arith.constant 0 : i32
    return %arg0, %c0_i32 : i32, i32
  }
}

</mosaic_0001>

<bundles_post_ra>
// kernel: tpu_custom_call.1
= control target key start
LH: loop header
LB: loop body
LE: loop exit
PB: predicated region body
PF: predicated region fallthrough
CT: control target
= control target key end

     0   :  { %7 = vsyncpa [#allocation3], 0  ;;  %s2146_s0 = inlined_call_operand.hbm [shape: f32[256,128], index: 0, kind: input, shape index: {}]   ;;  %s2147_s1 = inlined_call_operand.hbm [shape: f32[384,128], index: 1, kind: input, shape index: {}]   ;;  %s2148_s2 = inlined_call_operand.hbm [shape: f32[256,128], index: 2, kind: output, shape index: {}]  }
   0x1   :  { %9 = vsyncpa [#allocation3 + $0x1], 0 }
   0x2   :  { %10 = vsyncpa [#allocation6], 0 }
   0x3   :  { %11 = vsyncpa [#allocation4], 0 }
   0x4   :  { %13 = vsyncpa [#allocation4 + $0x1], 0  ;;  %s1674_s9 = smov 0   ;;  %s1676_s10 = smov 0  }
   0x5   :  { %s1678_s11 = smov 0   ;;  %s1680_s12 = smov 0  }
   0x6 LB: > { %s1695_s13 = sadd.s32 4294967295, %s1650_s12   ;;  %s1003_s14 = sadd.s32 4294967294, %s1650_s12   ;;  %s1650_s12 = sphi %s1680_s12, %s2168_s12   ;;  %s1646_s11 = sphi %s1678_s11, %s2167_s11   ;;  %s1642_s10 = sphi %s1676_s10, %s2166_s10   ;;  %s1638_s9 = sphi %s1674_s9, %s2165_s9  }
   0x7   : > { %p39_p0 = scmp.ne.s32.totalorder %s1642_s10, %s1638_s9  ;;  %p2149_p1 = scmp.eq.s32.totalorder %s1695_s13, 0 }
   0x8   : > { %p90_p3 = scmp.eq.s32.totalorder %s1003_s14, 1  ;;  %p1004_p5 = scmp.ge.s32.totalorder %s1650_s12, 1 }
   0x9   : > { %p1704_p4 = por %p2149_p1, %p39_p0  ;;  %p97_p7 = scmp.lt.s32.totalorder %s1650_s12, 3 }
   0xa   : > { %p1709_p6 = por %p90_p3, %p39_p0  ;;  %s1652_s18 = smov [#allocation5]  }
   0xb   : > { %s2152_s15 = scalar_select %p1704_p4, 1, 0 }
   0xc   : > { %s2153_s16 = scalar_select %p1709_p6, 1, 0 }
   0xd   : > { %p1714_p8 = pnand %p1004_p5, %p97_p7  ;;  %s109_s19 = sshll.u32 %s1652_s18, 4  ;;  %s1718_s19 = int_to_ptr.vmem [resolvable:$true] %s109_s19 }
   0xe   : > { %s1730_s21 = sadd.s32 1, %s1650_s12   ;;  %s26_s22 = sadd.s32 1, %s1646_s11 }
   0xf   : > { %s2154_s17 = scalar_select %p1714_p8, 1, 0 }
  0x10   : > { %p1405_p9 = pneg %p1714_p8  ;;  %s23_s23 = ssub.s32 %s1650_s12, %s1730_s21 }
  0x11   : > { %s1522_s26 = scalar_lea.hbm %s2147_s1, 6144 }
  0x12   : > { %p1725_p11 = pnand %p1405_p9, %p2149_p1  ;;  %p1523_p12 = scmp.ne.s32.totalorder %s2147_s1, %s1522_s26 }
  0x13   : > { %p1529_p5 = scmp.lt.u32.totalorder %s1522_s26, %s2147_s1 }
  0x14   : > { %p1524_p13 = pneg %p1725_p11 }
  0x16   : > { %p1525_p0 = pnand %p1524_p13, %p1523_p12 }
  0x18   : > { %p1526_p3 = pneg %p1525_p0 }
  0x1a   : > { %p1531_p7 = pnand %p1529_p5, %p1526_p3 }
  0x1c   : > { %1534 = shalt.err (!%p1531_p7)
}
  0x1d   : > { %s1535_s3 = scalar_lea.vmem %s1718_s19, 6144  ;;  %p1543_p2 = scmp.lt.s32.totalorder %s1718_s19, %s1718_s19 }
  0x1e   : > { %p1536_p9 = scmp.ne.s32.totalorder %s1718_s19, %s1535_s3  ;;  %p1544_p6 = scmp.lt.s32.totalorder %s1535_s3, %s1535_s3 }
  0x20   : > { %p1538_p10 = pnand %p1536_p9, %p1524_p13  ;;  %p1545_p4 = por %p1544_p6, %p1543_p2 }
  0x22   : > { %p1539_p1 = pneg %p1538_p10 }
  0x24   : > { %p1546_p8 = pnand %p1545_p4, %p1539_p1 }
  0x26   : > { %1549 = shalt.err (!%p1546_p8)
}
  0x27   : > { %s1653_s4 = smov 128   ;;  %s1654_s5 = smov 8  }
  0x28   : > { %1408 = dma.hbm_to_vmem [thread:$0]  (!%p1725_p11), %s2147_s1, 6144, %s1718_s19, [#allocation6], %s1653_s4, %s1653_s4, %s1654_s5  }
  0x29   : > { %p24_p1 = scmp.eq.s32.totalorder %s23_s23, 0  ;;  %p33_p2 = scmp.ne.s32.totalorder %s1646_s11, %s1642_s10 }
  0x2a   : > { %p34_p4 = scmp.eq.s32.totalorder %s1650_s12, 0  ;;  %p1418_p6 = scmp.lt.s32.totalorder %s1650_s12, 2 }
  0x2b   : > { %s1764_s8 = scalar_select %p24_p1, %s1646_s11, %s26_s22  }
  0x2c   : > { %p35_p8 = por %p34_p4, %p33_p2  ;;  %p2156_p10 = scmp.eq.s32.totalorder %s1695_s13, 1 }
  0x2d   : > { %s123_s18 = sand.u32 1, %s1646_s11   ;;  %s1019_s20 = sshll.u32 %s1650_s12, 11 }
  0x2e   : > { %p1768_p12 = por %p2156_p10, %p33_p2  ;;  %s1007_s24 = sshll.u32 %s123_s18, 7 }
  0x2f   : > { %s1777_s27 = scalar_lea.hbm %s2146_s0, %s1019_s20  ;;  %s127_s19 = scalar_lea.vmem [#allocation2], %s1007_s24 }
  0x30   : > { %s134_s22 = sshll.u32 %s127_s19, 4  ;;  %p1779_p11 = pnand %p1418_p6, %p35_p8  ;;  %s1783_s22 = int_to_ptr.vmem [resolvable:$true] %s134_s22 }
  0x31   : > { %s1785_s28 = scalar_lea.sflag [#allocation3], %s123_s18  ;;  %s1550_s29 = scalar_lea.hbm %s1777_s27, 2048 }
  0x32   : > { %p1551_p13 = scmp.ne.s32.totalorder %s1777_s27, %s1550_s29  ;;  %p1552_p0 = pneg %p1779_p11 }
  0x33   : > { %s1555_s6 = scalar_lea.hbm %s2146_s0, 4096  ;;  %p1556_p7 = scmp.lt.u32.totalorder %s1777_s27, %s2146_s0 }
  0x34   : > { %p1553_p3 = pnand %p1552_p0, %p1551_p13  ;;  %p1557_p9 = scmp.lt.u32.totalorder %s1555_s6, %s1550_s29 }
  0x35   : > { %p1559_p2 = scmp.lt.u32.totalorder %s1550_s29, %s1777_s27 }
  0x36   : > { %p1554_p5 = pneg %p1553_p3  ;;  %p1558_p1 = por %p1557_p9, %p1556_p7 }
  0x38   : > { %p1560_p4 = por %p1559_p2, %p1558_p1 }
  0x3a   : > { %p1561_p6 = pnand %p1560_p4, %p1554_p5 }
  0x3c   : > { %1564 = shalt.err (!%p1561_p6)
}
  0x3d   : > { %s1565_s18 = scalar_lea.vmem %s1783_s22, 2048  ;;  %s1655_s24 = smov [#allocation2]  }
  0x3e   : > { %p1566_p8 = scmp.ne.s32.totalorder %s1783_s22, %s1565_s18  ;;  %s1570_s25 = sshll.u32 %s1655_s24, 4  ;;  %s1571_s25 = int_to_ptr.vmem [resolvable:$false] %s1570_s25 }
  0x3f   : > { %s1572_s26 = scalar_lea.vmem %s1571_s25, 4096  ;;  %p1573_p3 = scmp.lt.s32.totalorder %s1783_s22, %s1571_s25 }
  0x40   : > { %p1568_p10 = pnand %p1566_p8, %p1552_p0  ;;  %p1574_p7 = scmp.lt.s32.totalorder %s1572_s26, %s1565_s18 }
  0x42   : > { %p1569_p13 = pneg %p1568_p10  ;;  %p1575_p9 = por %p1574_p7, %p1573_p3 }
  0x44   : > { %p1576_p1 = pnand %p1575_p9, %p1569_p13 }
  0x46   : > { %1579 = shalt.err (!%p1576_p1)
}
  0x47   : > { %1412 = dma.hbm_to_vmem [thread:$0]  (!%p1779_p11), %s1777_s27, 2048, %s1783_s22, %s1785_s28, %s1653_s4, %s1653_s4, %s1654_s5  }
  0x48   : > { %p2159_p0 = scmp.ne.s32.totalorder %s2154_s17, 0 }
  0x49   : > { %s1819_s19 = sand.u32 (!%p2159_p0), 1, %s1642_s10   ;;  %p2160_p5 = scmp.ne.s32.totalorder (!%p2159_p0), %s2152_s15, 0 }
  0x4a   : > { %146 = sbr.rel (%p2159_p0) target bundleno = 1126 (0x466), region = 28  ;;  %s1011_s29 = sshll.u32 (!%p2159_p0), %s1819_s19, 7 }
  0x4b   : > { %s149_s30 = scalar_lea.sflag (!%p2159_p0), [#allocation3], %s1819_s19  ;;  %s1825_s23 = scalar_lea.vmem (!%p2159_p0), [#allocation2], %s1011_s29 }
  0x51   : > { %1625 = dma.done.wait (%p2160_p5), %s149_s30, 2048  }
  0x52   : > { %1627 = vsyncadd (%p2160_p5), %s149_s30, 4294965248  ;;  %p2161_p11 = scmp.eq.s32.totalorder %s1695_s13, 0 }
  0x54   : > { %1629 = dma.done.wait (%p2161_p11), [#allocation6], 6144   ;;  %p2162_p2 = pmov %p2161_p11 }
  0x55   : > { %v195_v0 = vld [vmem:[#allocation5] sm:$0xff]  ;;  %v196_v1 = vld [vmem:[#allocation5 + $0x8] sm:$0xff]  ;;  %v197_v2 = vld [vmem:[#allocation5 + $0x10] sm:$0xff]  ;;  %s2017_s15 = scalar_lea.vmem [#allocation7], %s1011_s29  ;;  %s1020_s17 = sshll.u32 %s1695_s13, 11 }
  0x56   : > { %1631 = vsyncadd (%p2162_p2), [#allocation6], 4294961152  ;;  %v1285_v3 = vpack.c.bf16 %v196_v1, %v195_v0  ;;  %v198_v4 = vld [vmem:[#allocation5 + $0x18] sm:$0xff]  ;;  %v199_v6 = vld [vmem:[#allocation5 + $0x20] sm:$0xff]  ;;  %s920_s4 = sshll.u32 %s2017_s15, 4  ;;  %s2092_s22 = scalar_lea.hbm %s2148_s2, %s1020_s17  ;;  %s2094_s4 = int_to_ptr.vmem [resolvable:$true] %s920_s4 }
  0x57   : > { %v1289_v5 = vpack.c.bf16 %v198_v4, %v197_v2  ;;  %v200_v7 = vld [vmem:[#allocation5 + $0x28] sm:$0xff]  ;;  %v179_v9 = vld [vmem:[%s1825_s23] sm:$0xff]  ;;  %v201_v10 = vld [vmem:[#allocation5 + $0x30] sm:$0xff]  ;;  %s907_s13 = scalar_lea.sflag [#allocation4], %s1819_s19  ;;  %s1580_s28 = scalar_lea.vmem %s2094_s4, 2048 }
  0x58   : > { %1286 = vmatprep.subr.bf16.mxu0 %v1285_v3  ;;  %v1293_v8 = vpack.c.bf16 %v200_v7, %v199_v6  ;;  %v202_v11 = vld [vmem:[#allocation5 + $0x38] sm:$0xff]  ;;  %1149 = vmatprep.mubr.f32.mxu0 %v179_v9  ;;  %v203_v13 = vld [vmem:[#allocation5 + $0x40] sm:$0xff]  ;;  %v204_v14 = vld [vmem:[#allocation5 + $0x48] sm:$0xff]  ;;  %p1581_p4 = scmp.ne.s32.totalorder %s2094_s4, %s1580_s28  ;;  %s1656_s3 = smov [#allocation7]  }
  0x59   : > { %1288 = vmatpush3.bf16.msra.mxu0 %v1285_v3  ;;  %v1297_v12 = vpack.c.bf16 %v202_v11, %v201_v10  ;;  %v211_v15 = vld [vmem:[#allocation5 + $0x80] sm:$0xff]  ;;  %v212_v16 = vld [vmem:[#allocation5 + $0x88] sm:$0xff]  ;;  %v213_v17 = vld [vmem:[#allocation5 + $0x90] sm:$0xff]  ;;  %v1301_v21 = vpack.c.bf16 %v204_v14, %v203_v13  ;;  %s1584_s6 = sshll.u32 %s1656_s3, 4  ;;  %s1585_s6 = int_to_ptr.vmem [resolvable:$false] %s1584_s6 }
  0x5a   : > { %1290 = vmatprep.subr.bf16.mxu0 %v1289_v5  ;;  %v214_v18 = vld [vmem:[#allocation5 + $0x98] sm:$0xff]  ;;  %v1317_v19 = vpack.c.bf16 %v212_v16, %v211_v15  ;;  %v215_v22 = vld [vmem:[#allocation5 + $0xa0] sm:$0xff]  ;;  %v216_v23 = vld [vmem:[#allocation5 + $0xa8] sm:$0xff]  ;;  %p1582_p6 = pnand %p1581_p4, %p1768_p12  ;;  %s1586_s7 = scalar_lea.vmem %s1585_s6, 4096 }
  0x5b   : > { %v1321_v20 = vpack.c.bf16 %v214_v18, %v213_v17  ;;  %v205_v24 = vld [vmem:[#allocation5 + $0x50] sm:$0xff]  ;;  %v206_v25 = vld [vmem:[#allocation5 + $0x58] sm:$0xff]  ;;  %v1325_v26 = vpack.c.bf16 %v216_v23, %v215_v22  ;;  %v207_v30 = vld [vmem:[#allocation5 + $0x60] sm:$0xff]  ;;  %p1587_p10 = scmp.lt.s32.totalorder %s2094_s4, %s1585_s6  ;;  %p1588_p13 = scmp.lt.s32.totalorder %s1586_s7, %s1580_s28 }
  0x5c   : > { %1318 = vmatprep.subr.bf16.mxu1 %v1317_v19  ;;  %v1305_v27 = vpack.c.bf16 %v206_v25, %v205_v24  ;;  %v217_v28 = vld [vmem:[#allocation5 + $0xb0] sm:$0xff]  ;;  %v218_v29 = vld [vmem:[#allocation5 + $0xb8] sm:$0xff]  ;;  %v208_v31 = vld [vmem:[#allocation5 + $0x68] sm:$0xff]  ;;  %p1583_p8 = pneg %p1582_p6 }
  0x5d   : > { %1292 = vmatpush3.bf16.msra.mxu0 %v1289_v5  ;;  %1320 = vmatpush3.bf16.msra.mxu1 %v1317_v19  ;;  %v1329_v32 = vpack.c.bf16 %v218_v29, %v217_v28  ;;  %v1309_v33 = vpack.c.bf16 %v208_v31, %v207_v30  ;;  %v219_v34 = vld [vmem:[#allocation5 + $0xc0] sm:$0xff]  ;;  %v220_v35 = vld [vmem:[#allocation5 + $0xc8] sm:$0xff]  ;;  %v209_v36 = vld [vmem:[#allocation5 + $0x70] sm:$0xff]  ;;  %p1589_p3 = por %p1588_p13, %p1587_p10 }
  0x5e   : > { %1294 = vmatprep.subr.bf16.mxu0 %v1293_v8  ;;  %1322 = vmatprep.subr.bf16.mxu1 %v1321_v20  ;;  %v210_v37 = vld [vmem:[#allocation5 + $0x78] sm:$0xff]  ;;  %v1333_v38 = vpack.c.bf16 %v220_v35, %v219_v34  ;;  %v221_v40 = vld [vmem:[#allocation5 + $0xd0] sm:$0xff]  ;;  %v223_v43 = vld [vmem:[#allocation5 + $0xe0] sm:$0xff] }
  0x5f   : > { %v1313_v39 = vpack.c.bf16 %v210_v37, %v209_v36  ;;  %v222_v41 = vld [vmem:[#allocation5 + $0xd8] sm:$0xff]  ;;  %v224_v44 = vld [vmem:[#allocation5 + $0xe8] sm:$0xff]  ;;  %v181_v47 = vld [vmem:[%s1825_s23 + $0x10] sm:$0xff]  ;;  %p1590_p7 = pnand %p1589_p3, %p1583_p8 }
  0x60   : > { %v1337_v42 = vpack.c.bf16 %v222_v41, %v221_v40  ;;  %v180_v45 = vld [vmem:[%s1825_s23 + $0x8] sm:$0xff]  ;;  %v1341_v46 = vpack.c.bf16 %v224_v44, %v223_v43  ;;  %v182_v48 = vld [vmem:[%s1825_s23 + $0x18] sm:$0xff]  ;;  %v183_v49 = vld [vmem:[%s1825_s23 + $0x20] sm:$0xff] }
  0x61   : > { %1296 = vmatpush3.bf16.msra.mxu0 %v1293_v8  ;;  %1324 = vmatpush3.bf16.msra.mxu1 %v1321_v20  ;;  %v184_v50 = vld [vmem:[%s1825_s23 + $0x28] sm:$0xff]  ;;  %v185_v51 = vld [vmem:[%s1825_s23 + $0x30] sm:$0xff]  ;;  %v186_v52 = vld [vmem:[%s1825_s23 + $0x38] sm:$0xff] }
  0x62   : > { %1298 = vmatprep.subr.bf16.mxu0 %v1297_v12  ;;  %1326 = vmatprep.subr.bf16.mxu1 %v1325_v26  ;;  %v187_v53 = vld [vmem:[%s1825_s23 + $0x40] sm:$0xff]  ;;  %v188_v54 = vld [vmem:[%s1825_s23 + $0x48] sm:$0xff]  ;;  %v189_v55 = vld [vmem:[%s1825_s23 + $0x50] sm:$0xff] }
  0x63   : > { %v190_v56 = vld [vmem:[%s1825_s23 + $0x58] sm:$0xff]  ;;  %v191_v57 = vld [vmem:[%s1825_s23 + $0x60] sm:$0xff]  ;;  %v192_v58 = vld [vmem:[%s1825_s23 + $0x68] sm:$0xff] }
  0x64   : > { %v193_v59 = vld [vmem:[%s1825_s23 + $0x70] sm:$0xff]  ;;  %v194_v60 = vld [vmem:[%s1825_s23 + $0x78] sm:$0xff]  ;;  %v227_v0 = vld [vmem:[#allocation5 + $0x100] sm:$0xff] }
  0x65   : > { %1300 = vmatpush3.bf16.msra.mxu0 %v1297_v12  ;;  %1328 = vmatpush3.bf16.msra.mxu1 %v1325_v26  ;;  %v225_v61 = vld [vmem:[#allocation5 + $0xf0] sm:$0xff]  ;;  %v226_v62 = vld [vmem:[#allocation5 + $0xf8] sm:$0xff]  ;;  %v228_v1 = vld [vmem:[#allocation5 + $0x108] sm:$0xff] }
  0x66   : > { %1302 = vmatprep.subr.bf16.mxu0 %v1301_v21  ;;  %1330 = vmatprep.subr.bf16.mxu1 %v1329_v32  ;;  %v1345_v63 = vpack.c.bf16 %v226_v62, %v225_v61  ;;  %v229_v2 = vld [vmem:[#allocation5 + $0x110] sm:$0xff]  ;;  %v1349_v3 = vpack.c.bf16 %v228_v1, %v227_v0  ;;  %v230_v4 = vld [vmem:[#allocation5 + $0x118] sm:$0xff]  ;;  %v231_v6 = vld [vmem:[#allocation5 + $0x120] sm:$0xff] }
  0x67   : > { %v1353_v5 = vpack.c.bf16 %v230_v4, %v229_v2  ;;  %v232_v7 = vld [vmem:[#allocation5 + $0x128] sm:$0xff]  ;;  %v233_v9 = vld [vmem:[#allocation5 + $0x130] sm:$0xff]  ;;  %v234_v10 = vld [vmem:[#allocation5 + $0x138] sm:$0xff] }
  0x68   : > { %v1357_v8 = vpack.c.bf16 %v232_v7, %v231_v6  ;;  %v1361_v11 = vpack.c.bf16 %v234_v10, %v233_v9  ;;  %v235_v12 = vld [vmem:[#allocation5 + $0x140] sm:$0xff]  ;;  %v236_v13 = vld [vmem:[#allocation5 + $0x148] sm:$0xff]  ;;  %v237_v15 = vld [vmem:[#allocation5 + $0x150] sm:$0xff] }
  0x69   : > { %1304 = vmatpush3.bf16.msra.mxu0 %v1301_v21  ;;  %1332 = vmatpush3.bf16.msra.mxu1 %v1329_v32  ;;  %v1365_v14 = vpack.c.bf16 %v236_v13, %v235_v12  ;;  %v238_v16 = vld [vmem:[#allocation5 + $0x158] sm:$0xff]  ;;  %v239_v18 = vld [vmem:[#allocation5 + $0x160] sm:$0xff]  ;;  %v240_v19 = vld [vmem:[#allocation5 + $0x168] sm:$0xff] }
  0x6a   : > { %1306 = vmatprep.subr.bf16.mxu0 %v1305_v27  ;;  %1334 = vmatprep.subr.bf16.mxu1 %v1333_v38  ;;  %v1369_v17 = vpack.c.bf16 %v238_v16, %v237_v15  ;;  %v1373_v20 = vpack.c.bf16 %v240_v19, %v239_v18 }
  0x6d   : > { %1308 = vmatpush3.bf16.msra.mxu0 %v1305_v27  ;;  %1336 = vmatpush3.bf16.msra.mxu1 %v1333_v38 }
  0x6e   : > { %1310 = vmatprep.subr.bf16.mxu0 %v1309_v33  ;;  %1338 = vmatprep.subr.bf16.mxu1 %v1337_v42 }
  0x71   : > { %1312 = vmatpush3.bf16.msra.mxu0 %v1309_v33  ;;  %1340 = vmatpush3.bf16.msra.mxu1 %v1337_v42 }
  0x72   : > { %1314 = vmatprep.subr.bf16.mxu0 %v1313_v39  ;;  %1342 = vmatprep.subr.bf16.mxu1 %v1341_v46 }
  0x75   : > { %1316 = vmatpush3.bf16.msra.mxu0 %v1313_v39  ;;  %1344 = vmatpush3.bf16.msra.mxu1 %v1341_v46 }
  0x76   : > { %1346 = vmatprep.subr.bf16.mxu1 %v1345_v63  ;;  %1350 = vmatprep.subr.bf16.mxu0 %v1349_v3 }
  0x78   : > { %1150 = vmatmul.mubr.f32.vlgmr.msra.gmra.mrb[0].mxu0 %v180_v45 }
  0x79   : > { %1152 = vmatprep.mubr.f32.mxu0 %v181_v47  ;;  %1348 = vmatpush3.bf16.msra.mxu1 %v1345_v63 }
  0x7a   : > { %1381 = vmatprep.subr.bf16.mxu1 %v1349_v3  ;;  %1352 = vmatpush3.bf16.msra.mxu0 %v1349_v3 }
  0x7b   : > { %1354 = vmatprep.subr.bf16.mxu0 %v1353_v5 }
  0x7c   : > { %1153 = vmatmul.mubr.f32.gmra.mrb[2].mxu0 %v182_v48 }
  0x7d   : > { %1155 = vmatprep.mubr.f32.mxu0 %v183_v49 }
  0x7e   : > { %1356 = vmatpush3.bf16.msra.mxu0 %v1353_v5 }
  0x7f   : > { %1358 = vmatprep.subr.bf16.mxu0 %v1357_v8 }
  0x80   : > { %1156 = vmatmul.mubr.f32.gmra.mrb[4].mxu0 %v184_v50 }
  0x81   : > { %1158 = vmatprep.mubr.f32.mxu0 %v185_v51 }
  0x82   : > { %1360 = vmatpush3.bf16.msra.mxu0 %v1357_v8 }
  0x83   : > { %1362 = vmatprep.subr.bf16.mxu0 %v1361_v11 }
  0x84   : > { %1159 = vmatmul.mubr.f32.gmra.mrb[6].mxu0 %v186_v52 }
  0x85   : > { %1161 = vmatprep.mubr.f32.mxu0 %v187_v53  ;;  %v241_v53 = vld [vmem:[#allocation5 + $0x170] sm:$0xff] }
  0x86   : > { %1364 = vmatpush3.bf16.msra.mxu0 %v1361_v11 }
  0x87   : > { %1366 = vmatprep.subr.bf16.mxu0 %v1365_v14 }
  0x88   : > { %1162 = vmatmul.mubr.f32.gmra.mrb[8].mxu0 %v188_v54  ;;  %v242_v54 = vld [vmem:[#allocation5 + $0x178] sm:$0xff] }
  0x89   : > { %1164 = vmatprep.mubr.f32.mxu0 %v189_v55  ;;  %v1377_v55 = vpack.c.bf16 %v242_v54, %v241_v53 }
  0x8a   : > { %1368 = vmatpush3.bf16.msra.mxu0 %v1365_v14 }
  0x8b   : > { %1370 = vmatprep.subr.bf16.mxu0 %v1369_v17 }
  0x8c   : > { %1165 = vmatmul.mubr.f32.gmra.mrb[10].mxu0 %v190_v56 }
  0x8d   : > { %1167 = vmatprep.mubr.f32.mxu0 %v191_v57 }
  0x8e   : > { %1372 = vmatpush3.bf16.msra.mxu0 %v1369_v17 }
  0x8f   : > { %1374 = vmatprep.subr.bf16.mxu0 %v1373_v20 }
  0x90   : > { %1168 = vmatmul.mubr.f32.gmra.mrb[12].mxu0 %v192_v58 }
  0x91   : > { %1170 = vmatprep.mubr.f32.mxu0 %v193_v59 }
  0x92   : > { %1376 = vmatpush3.bf16.msra.mxu0 %v1373_v20 }
  0x93   : > { %1378 = vmatprep.subr.bf16.mxu0 %v1377_v55 }
  0x94   : > { %1171 = vmatmul.mubr.f32.gmra.mrb[14].mxu0 %v194_v60 }
  0x96   : > { %1380 = vmatpush3.bf16.msra.mxu0 %v1377_v55 }
 0x14b   : > { %v1151_v21 = vpop.f32.mrb[0].mxu0 }
 0x14c   : > { %v309_v22 = vpop.f32.mrb[1].mxu0  ;;  %v389_v24 = vmax.f32 %v1151_v21, 0.0 }
 0x14d   : > { %v388_v23 = vmax.f32 %v309_v22, 0.0 }
 0x14f   : > { %v1154_v25 = vpop.f32.mrb[2].mxu0  ;;  %1205 = vmatprep.mubr.f32.mxu1 %v388_v23 }
 0x150   : > { %v319_v26 = vpop.f32.mrb[3].mxu0  ;;  %1206 = vmatmul.mubr.f32.vlgmr.msra.gmra.mrb[0].mxu1 %v389_v24  ;;  %v391_v28 = vmax.f32 %v1154_v25, 0.0  ;;  %v710_v24 = vlaneseq }
 0x151   : > { %v390_v27 = vmax.f32 %v319_v26, 0.0  ;;  %1389 = vmatpush3.bf16.msra.mxu1 %v1349_v3 }
 0x152   : > { %1382 = vmatprep.subr.bf16.mxu1 %v1353_v5  ;;  %v1851_v25 = vand.u32 127, %v710_v24 }
 0x153   : > { %v1157_v29 = vpop.f32.mrb[4].mxu0  ;;  %1208 = vmatprep.mubr.f32.mxu1 %v390_v27 }
 0x154   : > { %v393_v30 = vmax.f32 %v1157_v29, 0.0  ;;  %v329_v31 = vpop.f32.mrb[5].mxu0  ;;  %1209 = vmatmul.mubr.f32.gmra.mrb[2].mxu1 %v391_v28  ;;  %vm712_vm0 = vcmp.lt.s32.totalorder %v1851_v25, 6  ;;  %vm873_vm1 = vcmp.eq.s32.totalorder %v1851_v25, 6 }
 0x155   : > { %v392_v32 = vmax.f32 %v329_v31, 0.0  ;;  %1390 = vmatpush3.bf16.msra.mxu1 %v1353_v5 }
 0x156   : > { %1383 = vmatprep.subr.bf16.mxu1 %v1357_v8 }
 0x157   : > { %v1160_v33 = vpop.f32.mrb[6].mxu0  ;;  %1211 = vmatprep.mubr.f32.mxu1 %v392_v32 }
 0x158   : > { %v395_v34 = vmax.f32 %v1160_v33, 0.0  ;;  %v339_v35 = vpop.f32.mrb[7].mxu0  ;;  %1212 = vmatmul.mubr.f32.gmra.mrb[4].mxu1 %v393_v30 }
 0x159   : > { %v394_v36 = vmax.f32 %v339_v35, 0.0  ;;  %1391 = vmatpush3.bf16.msra.mxu1 %v1357_v8 }
 0x15a   : > { %1384 = vmatprep.subr.bf16.mxu1 %v1361_v11 }
 0x15b   : > { %v1163_v37 = vpop.f32.mrb[8].mxu0  ;;  %1214 = vmatprep.mubr.f32.mxu1 %v394_v36 }
 0x15c   : > { %v397_v38 = vmax.f32 %v1163_v37, 0.0  ;;  %v349_v39 = vpop.f32.mrb[9].mxu0  ;;  %1215 = vmatmul.mubr.f32.gmra.mrb[6].mxu1 %v395_v34 }
 0x15d   : > { %v396_v40 = vmax.f32 %v349_v39, 0.0  ;;  %1392 = vmatpush3.bf16.msra.mxu1 %v1361_v11 }
 0x15e   : > { %1385 = vmatprep.subr.bf16.mxu1 %v1365_v14 }
 0x15f   : > { %v1166_v41 = vpop.f32.mrb[10].mxu0  ;;  %1217 = vmatprep.mubr.f32.mxu1 %v396_v40 }
 0x160   : > { %v399_v42 = vmax.f32 %v1166_v41, 0.0  ;;  %v359_v43 = vpop.f32.mrb[11].mxu0  ;;  %1218 = vmatmul.mubr.f32.gmra.mrb[8].mxu1 %v397_v38 }
 0x161   : > { %v398_v44 = vmax.f32 %v359_v43, 0.0  ;;  %1393 = vmatpush3.bf16.msra.mxu1 %v1365_v14 }
 0x162   : > { %1386 = vmatprep.subr.bf16.mxu1 %v1369_v17 }
 0x163   : > { %v1169_v45 = vpop.f32.mrb[12].mxu0  ;;  %1220 = vmatprep.mubr.f32.mxu1 %v398_v44 }
 0x164   : > { %v401_v46 = vmax.f32 %v1169_v45, 0.0  ;;  %v369_v47 = vpop.f32.mrb[13].mxu0  ;;  %1221 = vmatmul.mubr.f32.gmra.mrb[10].mxu1 %v399_v42 }
 0x165   : > { %v400_v48 = vmax.f32 %v369_v47, 0.0  ;;  %1394 = vmatpush3.bf16.msra.mxu1 %v1369_v17 }
 0x166   : > { %1387 = vmatprep.subr.bf16.mxu1 %v1373_v20 }
 0x167   : > { %v1172_v49 = vpop.f32.mrb[14].mxu0  ;;  %1223 = vmatprep.mubr.f32.mxu1 %v400_v48 }
 0x168   : > { %v403_v50 = vmax.f32 %v1172_v49, 0.0  ;;  %v379_v51 = vpop.f32.mrb[15].mxu0  ;;  %1224 = vmatmul.mubr.f32.gmra.mrb[12].mxu1 %v401_v46 }
 0x169   : > { %v402_v52 = vmax.f32 %v379_v51, 0.0  ;;  %1395 = vmatpush3.bf16.msra.mxu1 %v1373_v20 }
 0x16a   : > { %1388 = vmatprep.subr.bf16.mxu1 %v1377_v55 }
 0x16b   : > { %1226 = vmatprep.mubr.f32.mxu1 %v402_v52 }
 0x16c   : > { %1227 = vmatmul.mubr.f32.gmra.mrb[14].mxu1 %v403_v50 }
 0x16d   : > { %1396 = vmatpush3.bf16.msra.mxu1 %v1377_v55 }
 0x223   : > { %v1207_v56 = vpop.f32.mrb[0].mxu1 }
 0x224   : > { %v470_v57 = vpop.f32.mrb[1].mxu1  ;;  %v550_v59 = vmax.f32 %v1207_v56, 0.0 }
 0x225   : > { %v549_v58 = vmax.f32 %v470_v57, 0.0 }
 0x227   : > { %v1210_v60 = vpop.f32.mrb[2].mxu1  ;;  %1261 = vmatprep.mubr.f32.mxu0 %v549_v58 }
 0x228   : > { %v480_v61 = vpop.f32.mrb[3].mxu1  ;;  %1262 = vmatmul.mubr.f32.vlgmr.msra.gmra.mrb[16].mxu0 %v550_v59  ;;  %v552_v63 = vmax.f32 %v1210_v60, 0.0 }
 0x229   : > { %v551_v62 = vmax.f32 %v480_v61, 0.0 }
 0x22b   : > { %v1213_v0 = vpop.f32.mrb[4].mxu1  ;;  %1264 = vmatprep.mubr.f32.mxu0 %v551_v62 }
 0x22c   : > { %v554_v1 = vmax.f32 %v1213_v0, 0.0  ;;  %v490_v2 = vpop.f32.mrb[5].mxu1  ;;  %1265 = vmatmul.mubr.f32.gmra.mrb[18].mxu0 %v552_v63 }
 0x22d   : > { %v553_v3 = vmax.f32 %v490_v2, 0.0 }
 0x22f   : > { %v1216_v4 = vpop.f32.mrb[6].mxu1  ;;  %1267 = vmatprep.mubr.f32.mxu0 %v553_v3 }
 0x230   : > { %v556_v5 = vmax.f32 %v1216_v4, 0.0  ;;  %v500_v6 = vpop.f32.mrb[7].mxu1  ;;  %1268 = vmatmul.mubr.f32.gmra.mrb[20].mxu0 %v554_v1 }
 0x231   : > { %v555_v7 = vmax.f32 %v500_v6, 0.0 }
 0x233   : > { %v1219_v8 = vpop.f32.mrb[8].mxu1  ;;  %1270 = vmatprep.mubr.f32.mxu0 %v555_v7 }
 0x234   : > { %v558_v9 = vmax.f32 %v1219_v8, 0.0  ;;  %v510_v10 = vpop.f32.mrb[9].mxu1  ;;  %1271 = vmatmul.mubr.f32.gmra.mrb[22].mxu0 %v556_v5 }
 0x235   : > { %v557_v11 = vmax.f32 %v510_v10, 0.0 }
 0x237   : > { %v1222_v12 = vpop.f32.mrb[10].mxu1  ;;  %1273 = vmatprep.mubr.f32.mxu1 %v557_v11 }
 0x238   : > { %v560_v13 = vmax.f32 %v1222_v12, 0.0  ;;  %v520_v14 = vpop.f32.mrb[11].mxu1  ;;  %1274 = vmatmul.mubr.f32.vlgmr.msra.gmra.mrb[16].mxu1 %v558_v9 }
 0x239   : > { %v559_v15 = vmax.f32 %v520_v14, 0.0 }
 0x23b   : > { %v1225_v16 = vpop.f32.mrb[12].mxu1  ;;  %1276 = vmatprep.mubr.f32.mxu1 %v559_v15 }
 0x23c   : > { %v562_v17 = vmax.f32 %v1225_v16, 0.0  ;;  %v530_v18 = vpop.f32.mrb[13].mxu1  ;;  %1277 = vmatmul.mubr.f32.gmra.mrb[18].mxu1 %v560_v13 }
 0x23d   : > { %v561_v19 = vmax.f32 %v530_v18, 0.0 }
 0x23f   : > { %v1228_v20 = vpop.f32.mrb[14].mxu1  ;;  %1279 = vmatprep.mubr.f32.mxu1 %v561_v19 }
 0x240   : > { %v564_v21 = vmax.f32 %v1228_v20, 0.0  ;;  %v540_v22 = vpop.f32.mrb[15].mxu1  ;;  %1280 = vmatmul.mubr.f32.gmra.mrb[20].mxu1 %v562_v17 }
 0x241   : > { %v563_v23 = vmax.f32 %v540_v22, 0.0 }
 0x243   : > { %1282 = vmatprep.mubr.f32.mxu1 %v563_v23 }
 0x244   : > { %1283 = vmatmul.mubr.f32.gmra.mrb[22].mxu1 %v564_v21 }
 0x2fb   : > { %v1854_v26 = vpop.f32.mrb[16].mxu0 }
 0x2fc   : > { %v1856_v27 = vpop.f32.mrb[17].mxu0  ;;  %v714_v28 = vsel %vm712_vm0, %v1854_v26, -inf }
 0x2fd   : > { %731 = vmax.xlane.f32.xlu0 %v714_v28  ;;  %v713_v31 = vsel %vm712_vm0, %v1856_v27, -inf }
 0x2ff   : > { %v1861_v29 = vpop.f32.mrb[18].mxu0 }
 0x300   : > { %v1863_v30 = vpop.f32.mrb[19].mxu0  ;;  %v716_v32 = vsel %vm712_vm0, %v1861_v29, -inf }
 0x301   : > { %729 = vmax.xlane.f32.xlu0 %v713_v31  ;;  %735 = vmax.xlane.f32.xlu1 %v716_v32  ;;  %v715_v35 = vsel %vm712_vm0, %v1863_v30, -inf }
 0x303   : > { %v1871_v33 = vpop.f32.mrb[20].mxu0 }
 0x304   : > { %v1873_v34 = vpop.f32.mrb[21].mxu0  ;;  %v718_v39 = vsel %vm712_vm0, %v1871_v33, -inf }
 0x305   : > { %733 = vmax.xlane.f32.xlu1 %v715_v35  ;;  %v717_v36 = vsel %vm712_vm0, %v1873_v34, -inf }
 0x306   : > { %737 = vmax.xlane.f32.xlu0 %v717_v36 }
 0x307   : > { %v1881_v37 = vpop.f32.mrb[22].mxu0 }
 0x308   : > { %v1883_v38 = vpop.f32.mrb[23].mxu0  ;;  %v720_v43 = vsel %vm712_vm0, %v1881_v37, -inf }
 0x309   : > { %739 = vmax.xlane.f32.xlu1 %v718_v39  ;;  %v719_v40 = vsel %vm712_vm0, %v1883_v38, -inf }
 0x30a   : > { %741 = vmax.xlane.f32.xlu0 %v719_v40 }
 0x30b   : > { %v1891_v41 = vpop.f32.mrb[16].mxu1 }
 0x30c   : > { %v1893_v42 = vpop.f32.mrb[17].mxu1  ;;  %v1908_v47 = vsel %vm712_vm0, %v1891_v41, -inf }
 0x30d   : > { %743 = vmax.xlane.f32.xlu1 %v720_v43  ;;  %v721_v44 = vsel %vm712_vm0, %v1893_v42, -inf }
 0x30e   : > { %745 = vmax.xlane.f32.xlu0 %v721_v44 }
 0x30f   : > { %v1901_v45 = vpop.f32.mrb[18].mxu1 }
 0x310   : > { %v1903_v46 = vpop.f32.mrb[19].mxu1  ;;  %v1924_v51 = vsel %vm712_vm0, %v1901_v45, -inf }
 0x311   : > { %747 = vmax.xlane.f32.xlu1 %v1908_v47  ;;  %v1914_v48 = vsel %vm712_vm0, %v1903_v46, -inf }
 0x312   : > { %749 = vmax.xlane.f32.xlu0 %v1914_v48 }
 0x313   : > { %v1917_v49 = vpop.f32.mrb[20].mxu1 }
 0x314   : > { %v1919_v50 = vpop.f32.mrb[21].mxu1  ;;  %v1940_v55 = vsel %vm712_vm0, %v1917_v49, -inf }
 0x315   : > { %751 = vmax.xlane.f32.xlu1 %v1924_v51  ;;  %v1930_v52 = vsel %vm712_vm0, %v1919_v50, -inf }
 0x316   : > { %753 = vmax.xlane.f32.xlu0 %v1930_v52 }
 0x317   : > { %v1933_v53 = vpop.f32.mrb[22].mxu1 }
 0x318   : > { %v1935_v54 = vpop.f32.mrb[23].mxu1  ;;  %v1952_v57 = vsel %vm712_vm0, %v1933_v53, -inf }
 0x319   : > { %755 = vmax.xlane.f32.xlu1 %v1940_v55  ;;  %v1946_v56 = vsel %vm712_vm0, %v1935_v54, -inf }
 0x31a   : > { %757 = vmax.xlane.f32.xlu0 %v1946_v56 }
 0x31d   : > { %759 = vmax.xlane.f32.xlu1 %v1952_v57 }
 0x38a   : > { %v732_v58 = vpop.xlane.xlu0 %731 }
 0x38b   : > { %v762_v59 = vsub.f32 %v714_v28, %v732_v58 }
 0x38d   : > { %v779_v60 = vmul.f32 1.442695, %v762_v59 }
 0x38e   : > { %v730_v61 = vpop.xlane.xlu0 %729  ;;  %v736_v62 = vpop.xlane.xlu1 %735 }
 0x38f   : > { %1458 = vpow2.f32 %v779_v60  ;;  %v761_v63 = vsub.f32 %v713_v31, %v730_v61  ;;  %v764_v0 = vsub.f32 %v716_v32, %v736_v62 }
 0x391   : > { %v777_v1 = vmul.f32 1.442695, %v761_v63  ;;  %v783_v2 = vmul.f32 1.442695, %v764_v0 }
 0x392   : > { %v734_v3 = vpop.xlane.xlu1 %733 }
 0x393   : > { %1460 = vpow2.f32 %v777_v1  ;;  %v763_v4 = vsub.f32 %v715_v35, %v734_v3  ;;  %v738_v5 = vpop.xlane.xlu0 %737 }
 0x394   : > { %1462 = vpow2.f32 %v783_v2  ;;  %v765_v6 = vsub.f32 %v717_v36, %v738_v5 }
 0x395   : > { %v781_v7 = vmul.f32 1.442695, %v763_v4 }
 0x396   : > { %v785_v8 = vmul.f32 1.442695, %v765_v6  ;;  %v740_v9 = vpop.xlane.xlu1 %739 }
 0x397   : > { %1464 = vpow2.f32 %v781_v7  ;;  %v766_v10 = vsub.f32 %v718_v39, %v740_v9  ;;  %v742_v11 = vpop.xlane.xlu0 %741 }
 0x398   : > { %v767_v12 = vsub.f32 %v719_v40, %v742_v11  ;;  %1466 = vpow2.f32 %v785_v8 }
 0x399   : > { %v1955_v13 = vpop.eup %1458  ;;  %v787_v14 = vmul.f32 1.442695, %v766_v10 }
 0x39a   : > { %v789_v15 = vmul.f32 1.442695, %v767_v12  ;;  %v744_v16 = vpop.xlane.xlu1 %743  ;;  %811 = vadd.xlane.f32.xlu1 %v1955_v13 }
 0x39b   : > { %1468 = vpow2.f32 %v787_v14  ;;  %v768_v17 = vsub.f32 %v720_v43, %v744_v16  ;;  %v746_v18 = vpop.xlane.xlu0 %745 }
 0x39c   : > { %v769_v19 = vsub.f32 %v721_v44, %v746_v18  ;;  %1470 = vpow2.f32 %v789_v15 }
 0x39d   : > { %v1958_v20 = vpop.eup %1460  ;;  %v791_v21 = vmul.f32 1.442695, %v768_v17 }
 0x39e   : > { %v1960_v22 = vpop.eup %1462  ;;  %v793_v23 = vmul.f32 1.442695, %v769_v19  ;;  %v748_v24 = vpop.xlane.xlu1 %747  ;;  %809 = vadd.xlane.f32.xlu0 %v1958_v20 }
 0x39f   : > { %1472 = vpow2.f32 %v791_v21  ;;  %v770_v28 = vsub.f32 %v1908_v47, %v748_v24  ;;  %815 = vadd.xlane.f32.xlu1 %v1960_v22  ;;  %v750_v31 = vpop.xlane.xlu0 %749 }
 0x3a0   : > { %v771_v32 = vsub.f32 %v1914_v48, %v750_v31  ;;  %1474 = vpow2.f32 %v793_v23 }
 0x3a1   : > { %v1966_v35 = vpop.eup %1464  ;;  %v795_v36 = vmul.f32 1.442695, %v770_v28 }
 0x3a2   : > { %v797_v39 = vmul.f32 1.442695, %v771_v32  ;;  %v752_v40 = vpop.xlane.xlu1 %751  ;;  %813 = vadd.xlane.f32.xlu0 %v1966_v35  ;;  %v1970_v58 = vpop.eup %1466 }
 0x3a3   : > { %1476 = vpow2.f32 %v795_v36  ;;  %v772_v43 = vsub.f32 %v1924_v51, %v752_v40  ;;  %v754_v44 = vpop.xlane.xlu0 %753 }
 0x3a4   : > { %v773_v47 = vsub.f32 %v1930_v52, %v754_v44  ;;  %1478 = vpow2.f32 %v797_v39 }
 0x3a5   : > { %v1973_v59 = vpop.eup %1468  ;;  %v799_v60 = vmul.f32 1.442695, %v772_v43 }
 0x3a6   : > { %v801_v48 = vmul.f32 1.442695, %v773_v47  ;;  %v756_v61 = vpop.xlane.xlu1 %755  ;;  %819 = vadd.xlane.f32.xlu1 %v1973_v59  ;;  %817 = vadd.xlane.f32.xlu0 %v1970_v58  ;;  %v1978_v51 = vpop.eup %1470 }
 0x3a7   : > { %1480 = vpow2.f32 %v799_v60  ;;  %v774_v62 = vsub.f32 %v1940_v55, %v756_v61  ;;  %v758_v63 = vpop.xlane.xlu0 %757 }
 0x3a8   : > { %v775_v0 = vsub.f32 %v1946_v56, %v758_v63  ;;  %1482 = vpow2.f32 %v801_v48 }
 0x3a9   : > { %v1981_v1 = vpop.eup %1472  ;;  %v803_v52 = vmul.f32 1.442695, %v774_v62 }
 0x3aa   : > { %v805_v2 = vmul.f32 1.442695, %v775_v0  ;;  %823 = vadd.xlane.f32.xlu1 %v1981_v1  ;;  %v760_v3 = vpop.xlane.xlu1 %759  ;;  %821 = vadd.xlane.f32.xlu0 %v1978_v51  ;;  %v1986_v5 = vpop.eup %1474 }
 0x3ab   : > { %1484 = vpow2.f32 %v803_v52  ;;  %v776_v4 = vsub.f32 %v1952_v57, %v760_v3 }
 0x3ac   : > { %1486 = vpow2.f32 %v805_v2 }
 0x3ad   : > { %v1988_v55 = vpop.eup %1476  ;;  %v807_v6 = vmul.f32 1.442695, %v776_v4 }
 0x3ae   : > { %827 = vadd.xlane.f32.xlu1 %v1988_v55  ;;  %825 = vadd.xlane.f32.xlu0 %v1986_v5  ;;  %v1992_v56 = vpop.eup %1478 }
 0x3af   : > { %1488 = vpow2.f32 %v807_v6 }
 0x3b1   : > { %v1994_v7 = vpop.eup %1480 }
 0x3b2   : > { %831 = vadd.xlane.f32.xlu1 %v1994_v7  ;;  %829 = vadd.xlane.f32.xlu0 %v1992_v56  ;;  %v1998_v57 = vpop.eup %1482 }
 0x3b5   : > { %v2000_v8 = vpop.eup %1484 }
 0x3b6   : > { %835 = vadd.xlane.f32.xlu1 %v2000_v8  ;;  %833 = vadd.xlane.f32.xlu0 %v1998_v57  ;;  %v2004_v9 = vpop.eup %1486 }
 0x3b9   : > { %v2006_v10 = vpop.eup %1488 }
 0x3ba   : > { %839 = vadd.xlane.f32.xlu1 %v2006_v10  ;;  %837 = vadd.xlane.f32.xlu0 %v2004_v9 }
 0x427   : > { %v812_v11 = vpop.xlane.xlu1 %811 }
 0x428   : > { %1490 = vrcp.f32 %v812_v11 }
 0x42b   : > { %v810_v12 = vpop.xlane.xlu0 %809 }
 0x42c   : > { %v816_v14 = vpop.xlane.xlu1 %815  ;;  %1492 = vrcp.f32 %v810_v12 }
 0x42d   : > { %1494 = vrcp.f32 %v816_v14 }
 0x42f   : > { %v814_v15 = vpop.xlane.xlu0 %813 }
 0x430   : > { %1496 = vrcp.f32 %v814_v15 }
 0x432   : > { %v1491_v16 = vpop.eup %1490 }
 0x433   : > { %v858_v17 = vmul.f32 %v1491_v16, %v1955_v13  ;;  %v820_v18 = vpop.xlane.xlu1 %819  ;;  %v818_v19 = vpop.xlane.xlu0 %817 }
 0x434   : > { %1498 = vrcp.f32 %v820_v18 }
 0x435   : > { %v875_v21 = vsel %vm873_vm1, %v1854_v26, %v858_v17  ;;  %1500 = vrcp.f32 %v818_v19 }
 0x436   : > { %v1493_v23 = vpop.eup %1492  ;;  %891 = vst [vmem:[%s2017_s15 + $0x8] sm:$0xff] %v875_v21 }
 0x437   : > { %v1495_v24 = vpop.eup %1494  ;;  %v857_v28 = vmul.f32 %v1493_v23, %v1958_v20  ;;  %v824_v13 = vpop.xlane.xlu1 %823 }
 0x438   : > { %v822_v31 = vpop.xlane.xlu0 %821  ;;  %v860_v32 = vmul.f32 %v1495_v24, %v1960_v22  ;;  %1502 = vrcp.f32 %v824_v13 }
 0x439   : > { %v874_v26 = vsel %vm873_vm1, %v1856_v27, %v857_v28  ;;  %1504 = vrcp.f32 %v822_v31 }
 0x43a   : > { %v1497_v36 = vpop.eup %1496  ;;  %v877_v39 = vsel %vm873_vm1, %v1861_v29, %v860_v32  ;;  %890 = vst [vmem:[%s2017_s15] sm:$0xff] %v874_v26 }
 0x43b   : > { %893 = vst [vmem:[%s2017_s15 + $0x18] sm:$0xff] %v877_v39  ;;  %v859_v20 = vmul.f32 %v1497_v36, %v1966_v35  ;;  %v828_v40 = vpop.xlane.xlu1 %827 }
 0x43c   : > { %v826_v43 = vpop.xlane.xlu0 %825  ;;  %1506 = vrcp.f32 %v828_v40 }
 0x43d   : > { %v876_v22 = vsel %vm873_vm1, %v1863_v30, %v859_v20  ;;  %1508 = vrcp.f32 %v826_v43 }
 0x43e   : > { %v1499_v27 = vpop.eup %1498  ;;  %892 = vst [vmem:[%s2017_s15 + $0x10] sm:$0xff] %v876_v22 }
 0x43f   : > { %v1501_v44 = vpop.eup %1500  ;;  %v862_v47 = vmul.f32 %v1499_v27, %v1973_v59  ;;  %v832_v29 = vpop.xlane.xlu1 %831 }
 0x440   : > { %v830_v60 = vpop.xlane.xlu0 %829  ;;  %v861_v48 = vmul.f32 %v1501_v44, %v1970_v58  ;;  %1510 = vrcp.f32 %v832_v29 }
 0x441   : > { %v879_v35 = vsel %vm873_vm1, %v1871_v33, %v862_v47  ;;  %1512 = vrcp.f32 %v830_v60 }
 0x442   : > { %v1503_v61 = vpop.eup %1502  ;;  %895 = vst [vmem:[%s2017_s15 + $0x28] sm:$0xff] %v879_v35  ;;  %v878_v30 = vsel %vm873_vm1, %v1873_v34, %v861_v48 }
 0x443   : > { %v1505_v62 = vpop.eup %1504  ;;  %894 = vst [vmem:[%s2017_s15 + $0x20] sm:$0xff] %v878_v30  ;;  %v864_v59 = vmul.f32 %v1503_v61, %v1981_v1  ;;  %v836_v63 = vpop.xlane.xlu1 %835 }
 0x444   : > { %v834_v58 = vpop.xlane.xlu0 %833  ;;  %v863_v0 = vmul.f32 %v1505_v62, %v1978_v51  ;;  %1514 = vrcp.f32 %v836_v63 }
 0x445   : > { %v881_v33 = vsel %vm873_vm1, %v1881_v37, %v864_v59  ;;  %1516 = vrcp.f32 %v834_v58 }
 0x446   : > { %v1507_v52 = vpop.eup %1506  ;;  %897 = vst [vmem:[%s2017_s15 + $0x38] sm:$0xff] %v881_v33  ;;  %v880_v34 = vsel %vm873_vm1, %v1883_v38, %v863_v0 }
 0x447   : > { %v1509_v2 = vpop.eup %1508  ;;  %896 = vst [vmem:[%s2017_s15 + $0x30] sm:$0xff] %v880_v34  ;;  %v866_v1 = vmul.f32 %v1507_v52, %v1988_v55  ;;  %v840_v51 = vpop.xlane.xlu1 %839 }
 0x448   : > { %v838_v3 = vpop.xlane.xlu0 %837  ;;  %v865_v4 = vmul.f32 %v1509_v2, %v1986_v5  ;;  %1518 = vrcp.f32 %v840_v51 }
 0x449   : > { %v883_v37 = vsel %vm873_vm1, %v1891_v41, %v866_v1  ;;  %1520 = vrcp.f32 %v838_v3 }
 0x44a   : > { %v1511_v6 = vpop.eup %1510  ;;  %899 = vst [vmem:[%s2017_s15 + $0x48] sm:$0xff] %v883_v37  ;;  %v882_v38 = vsel %vm873_vm1, %v1893_v42, %v865_v4 }
 0x44b   : > { %v1513_v55 = vpop.eup %1512  ;;  %898 = vst [vmem:[%s2017_s15 + $0x40] sm:$0xff] %v882_v38  ;;  %v868_v5 = vmul.f32 %v1511_v6, %v1994_v7 }
 0x44c   : > { %v867_v11 = vmul.f32 %v1513_v55, %v1992_v56 }
 0x44d   : > { %v885_v41 = vsel %vm873_vm1, %v1901_v45, %v868_v5 }
 0x44e   : > { %v1515_v12 = vpop.eup %1514  ;;  %901 = vst [vmem:[%s2017_s15 + $0x58] sm:$0xff] %v885_v41  ;;  %v884_v14 = vsel %vm873_vm1, %v1903_v46, %v867_v11 }
 0x44f   : > { %v1517_v15 = vpop.eup %1516  ;;  %900 = vst [vmem:[%s2017_s15 + $0x50] sm:$0xff] %v884_v14  ;;  %v870_v42 = vmul.f32 %v1515_v12, %v2000_v8 }
 0x450   : > { %v869_v7 = vmul.f32 %v1517_v15, %v1998_v57 }
 0x451   : > { %v887_v56 = vsel %vm873_vm1, %v1917_v49, %v870_v42 }
 0x452   : > { %v1519_v45 = vpop.eup %1518  ;;  %903 = vst [vmem:[%s2017_s15 + $0x68] sm:$0xff] %v887_v56  ;;  %v886_v46 = vsel %vm873_vm1, %v1919_v50, %v869_v7 }
 0x453   : > { %v1521_v16 = vpop.eup %1520  ;;  %902 = vst [vmem:[%s2017_s15 + $0x60] sm:$0xff] %v886_v46  ;;  %v872_v8 = vmul.f32 %v1519_v45, %v2006_v10 }
 0x454   : > { %v871_v57 = vmul.f32 %v1521_v16, %v2004_v9 }
 0x455   : > { %v889_v49 = vsel %vm873_vm1, %v1933_v53, %v872_v8 }
 0x456   : > { %905 = vst [vmem:[%s2017_s15 + $0x78] sm:$0xff] %v889_v49  ;;  %v888_v50 = vsel %vm873_vm1, %v1935_v54, %v871_v57 }
 0x457   : > { %904 = vst [vmem:[%s2017_s15 + $0x70] sm:$0xff] %v888_v50 }
 0x458   : > { %1593 = shalt.err (!%p1590_p7)
}
 0x459   : > { %s1594_s20 = scalar_lea.hbm %s2092_s22, 2048  ;;  %s1598_s25 = scalar_lea.hbm %s2148_s2, 4096 }
 0x45a   : > { %p1595_p9 = scmp.ne.s32.totalorder %s2092_s22, %s1594_s20  ;;  %p1599_p5 = scmp.lt.u32.totalorder %s2092_s22, %s2148_s2 }
 0x45b   : > { %p1600_p11 = scmp.lt.u32.totalorder %s1598_s25, %s1594_s20  ;;  %p1602_p4 = scmp.lt.u32.totalorder %s1594_s20, %s2092_s22 }
 0x45c   : > { %p1596_p1 = pnand %p1595_p9, %p1768_p12 }
 0x45d   : > { %p1601_p2 = por %p1600_p11, %p1599_p5 }
 0x45e   : > { %p1597_p0 = pneg %p1596_p1 }
 0x45f   : > { %p1603_p6 = por %p1602_p4, %p1601_p2 }
 0x461   : > { %p1604_p8 = pnand %p1603_p6, %p1597_p0 }
 0x463   : > { %1607 = shalt.err (!%p1604_p8)
}
 0x464   : > { %s1657_s30 = smov 128   ;;  %s1658_s23 = smov 8  }
 0x465   : > { %1403 = dma.vmem_to_hbm [thread:$0]  (%p1768_p12), %s2094_s4, 2048, %s2092_s22, %s907_s13, %s1657_s30, %s1657_s30, %s1658_s23  }
 0x466 PF: > { %s935_s15 = sand.u32 1, %s1638_s9   ;;  %p2163_p10 = scmp.ne.s32.totalorder %s2153_s16, 0 }
 0x467   : > { %p2164_p13 = scmp.ge.s32.totalorder %s1650_s12, 2  ;;  %s936_s17 = scalar_lea.sflag [#allocation4], %s935_s15 }
 0x469   : > { %p1414_p3 = pnand %p2164_p13, %p2163_p10 }
 0x46b   : > { %1633 = dma.done.wait (!%p1414_p3), %s936_s17, 2048  }
 0x46c   : > { %1635 = vsyncadd (!%p1414_p3), %s936_s17, 4294965248  ;;  %p16_p7 = scmp.ge.s32.totalorder %s1730_s21, 4   ;;  %s2165_s9 = smov %s1642_s10 }
 0x46d   : > { %s2166_s10 = smov %s1646_s11  ;;  %s2167_s11 = smov %s1764_s8 }
 0x46e   : > { %s2168_s12 = smov %s1730_s21  ;;  %18 = sbr.rel (!%p16_p7) target bundleno = 6 (0x6), region = 77 }
 0x475   :  { %941 = vsyncpa [#allocation3], 1 }
 0x476   :  { %943 = vsyncpa [#allocation3 + $0x1], 1 }
 0x477   :  { %944 = vsyncpa [#allocation6], 1 }
 0x478   :  { %945 = vsyncpa [#allocation4], 1 }
 0x479   :  { %947 = vsyncpa [#allocation4 + $0x1], 1 }

</bundles_post_ra>
